<compile_context>
chip_gen: v7x
topology: tpu7x:2x2x1
jax: 0.10.0
libtpu: 0.0.40
codegen_flags: <defaults>
</compile_context>

<pallas_src>
import functools

import jax
import jax.numpy as jnp
from jax.experimental import pallas as pl
from jax.experimental.pallas import tpu as pltpu

_LANE = 128
_SUBLANE = 8
_TARGET_X_BLOCK_BYTES = 8 * 1024 * 1024      # per-step activation DMA (~8 MiB)
_VMEM_DB_BUDGET_BYTES = 24 * 1024 * 1024     # double-buffered (x + out) budget
_MIN_VOXELS_FOR_PALLAS = 32 * 1024           # below this, use plain jnp (aux levels)


def _conv1x1_kernel(w_ref, b_ref, x_ref, o_ref):
    # w_ref: (C,) SMEM, b_ref: (1,) SMEM,
    # x_ref: (1, C, TR, 128) VMEM, o_ref: (1, TR, 128) VMEM.
    c_total = x_ref.shape[1]
    # Unrolled VPU weighted sum over channels (C is small & static); f32 accumulate.
    acc = x_ref[0, 0].astype(jnp.float32) * w_ref[0]
    for c in range(1, c_total):
        acc = acc + x_ref[0, c].astype(jnp.float32) * w_ref[c]
    o_ref[0] = (acc + b_ref[0]).astype(o_ref.dtype)


def _round_down(x, m):
    return (x // m) * m


def _reference_conv1x1(x, w, b):
    return jnp.einsum("ncdhw,c->ndhw", x.astype(jnp.float32),
                      w.astype(jnp.float32))[:, None] + b


@functools.partial(jax.jit, static_argnames=("target_block_bytes",))
def conv1x1x1_pallas(x, w, b, *, target_block_bytes=_TARGET_X_BLOCK_BYTES):
    """Pointwise Conv3d(C -> 1).

    x: (N, C, D, H, W);  w: (C,);  b: ()   ->  (N, 1, D, H, W) float32
    """
    N, C, D, H, W = x.shape
    S = D * H * W

    w = w.astype(jnp.float32).reshape(C)
    b = jnp.asarray(b, jnp.float32).reshape(1)

    # Small or raggedly-shaped inputs (e.g. tiny aux pyramid levels): fixed
    # pallas_call launch/pipeline overhead dominates -> plain XLA path.
    if (S % _LANE != 0) or (N * S < _MIN_VOXELS_FOR_PALLAS):
        out = jnp.einsum("ncdhw,c->ndhw", x.astype(jnp.float32), w) + b[0]
        return out[:, None]

    # Free reshape (contiguous trailing-dim split): NCDHW -> (N, C, R, 128).
    R = S // _LANE
    x_r = x.reshape(N, C, R, _LANE)

    itemsize = jnp.dtype(x.dtype).itemsize
    row_x_bytes = C * _LANE * itemsize           # one sublane-row of the x block
    row_o_bytes = _LANE * 4                      # one f32 output row
    tr = max(_SUBLANE, target_block_bytes // row_x_bytes)
    tr_cap = _VMEM_DB_BUDGET_BYTES // (2 * (row_x_bytes + row_o_bytes))
    tr = min(tr, max(_SUBLANE, tr_cap))
    if tr >= R:
        tr = R                                    # single block; full-dim always legal
    else:
        tr = max(_SUBLANE, _round_down(tr, _SUBLANE))   # sublane-dense multiple of 8

    n_row_tiles = -(-R // tr)                     # cdiv; ragged tail is masked by Pallas
    vmem_need = 2 * tr * _LANE * (C * itemsize + 4)
    vmem_limit = int(vmem_need) + 4 * 1024 * 1024

    out = pl.pallas_call(
        _conv1x1_kernel,
        out_shape=jax.ShapeDtypeStruct((N, R, _LANE), jnp.float32),
        grid=(N, n_row_tiles),
        in_specs=[
            pl.BlockSpec(memory_space=pltpu.MemorySpace.SMEM),            # w (C,)
            pl.BlockSpec(memory_space=pltpu.MemorySpace.SMEM),            # b (1,)
            pl.BlockSpec((1, C, tr, _LANE), lambda n, r: (n, 0, r, 0)),   # activations
        ],
        out_specs=pl.BlockSpec((1, tr, _LANE), lambda n, r: (n, r, 0)),
        compiler_params=pltpu.CompilerParams(
            dimension_semantics=("parallel", "parallel"),
            vmem_limit_bytes=vmem_limit,
        ),
    )(w, b, x_r)

    return out.reshape(N, 1, D, H, W)


class SegSigHeadPallas:
    """JAX/Pallas port of SegSigHead.forward (the inference-relevant path)."""

    def __init__(self, in_channels, is_aux=False, key=None):
        if key is None:
            key = jax.random.PRNGKey(0)
        self.is_aux = is_aux
        self.in_channels = in_channels
        # conv, conv1, conv2, conv3 channel counts (as in the torch module).
        chans = [in_channels, in_channels, 2 * in_channels, 4 * in_channels]
        self.weights = []
        self.biases = []
        for i, c in enumerate(chans):
            kw, kb = jax.random.split(jax.random.fold_in(key, i))
            bound = 1.0 / jnp.sqrt(jnp.asarray(c, jnp.float32))
            self.weights.append(
                jax.random.uniform(kw, (c,), jnp.float32, -bound, bound))
            self.biases.append(
                jax.random.uniform(kb, (), jnp.float32, -bound, bound))

    def forward(self, inputs):
        if self.is_aux:
            # inputs: list of 4 NCDHW arrays with C, C, 2C, 4C channels.
            return [
                conv1x1x1_pallas(inputs[idx], self.weights[idx], self.biases[idx])
                for idx in range(len(inputs))
            ]
        # inputs: single NCDHW array with C channels.
        return conv1x1x1_pallas(inputs, self.weights[0], self.biases[0])

    # TODO(synk): loss() / _dice_loss() (training-only, torch.no_grad + BCE/Dice)
    # not ported; only the forward pass is implemented as requested.


if __name__ == "__main__":
    key = jax.random.PRNGKey(0)
    in_channels = 4

    # ---- non-aux path: predicts = self.conv(inputs)  (Pallas path) ----
    head = SegSigHeadPallas(in_channels, is_aux=False, key=key)
    x = jax.random.normal(jax.random.fold_in(key, 100),
                          (2, in_channels, 32, 32, 32), jnp.float32)
    out = jax.block_until_ready(head.forward(x))
    ref = _reference_conv1x1(x, head.weights[0], head.biases[0])
    assert out.shape == (2, 1, 32, 32, 32), out.shape
    assert jnp.allclose(out, ref, atol=1e-5, rtol=1e-5)

    # ---- Pallas path with a ragged row-tile tail (exercises masked edge blocks) ----
    xt = jax.random.normal(jax.random.fold_in(key, 300),
                           (1, in_channels, 48, 48, 48), jnp.float32)
    wt = jax.random.normal(jax.random.fold_in(key, 301), (in_channels,), jnp.float32)
    bt = jnp.float32(0.25)
    out_t = jax.block_until_ready(
        conv1x1x1_pallas(xt, wt, bt, target_block_bytes=1 << 20))
    ref_t = _reference_conv1x1(xt, wt, bt)
    assert out_t.shape == (1, 1, 48, 48, 48), out_t.shape
    assert jnp.allclose(out_t, ref_t, atol=1e-5, rtol=1e-5)

    # ---- aux path: one 1x1x1 conv per pyramid level
    #      (large level -> Pallas, tiny levels -> jnp fallback) ----
    head_aux = SegSigHeadPallas(in_channels, is_aux=True, key=key)
    aux_inputs = [
        jax.random.normal(jax.random.fold_in(key, 200),
                          (2, in_channels, 32, 32, 32), jnp.float32),
        jax.random.normal(jax.random.fold_in(key, 201),
                          (2, in_channels, 16, 16, 16), jnp.float32),
        jax.random.normal(jax.random.fold_in(key, 202),
                          (2, 2 * in_channels, 8, 8, 8), jnp.float32),
        jax.random.normal(jax.random.fold_in(key, 203),
                          (2, 4 * in_channels, 4, 4, 4), jnp.float32),
    ]
    aux_out = jax.block_until_ready(head_aux.forward(aux_inputs))
    for idx, (xi, oi) in enumerate(zip(aux_inputs, aux_out)):
        ri = _reference_conv1x1(xi, head_aux.weights[idx], head_aux.biases[idx])
        assert oi.shape == (xi.shape[0], 1) + xi.shape[2:], oi.shape
        assert jnp.allclose(oi, ri, atol=1e-5, rtol=1e-5)

    print("KERNEL_OK")
</pallas_src>

<mosaic_0001>
module attributes {stable_mosaic.version = 11 : i64} {
  func.func @_conv1x1_kernel(%arg0: i32, %arg1: i32, %arg2: memref<4xf32, #tpu.memory_space<smem>>, %arg3: memref<1xf32, #tpu.memory_space<smem>>, %arg4: memref<1x4x256x128xf32, #tpu.memory_space<vmem>>, %arg5: memref<1x256x128xf32, #tpu.memory_space<vmem>>) attributes {dimension_semantics = [#tpu.dimension_semantics<parallel>, #tpu.dimension_semantics<parallel>], iteration_bounds = array<i64: 2, 1>, scalar_prefetch = 0 : i64, scratch_operands = 0 : i64, tpu.core_type = #tpu.core_type<tc>, window_params = [{transform_indices = @transform_0, window_bounds = array<i64: 4>}, {transform_indices = @transform_1, window_bounds = array<i64: 1>}, {transform_indices = @transform_2, window_bounds = array<i64: 1, 4, 256, 128>}, {transform_indices = @transform_3, window_bounds = array<i64: 1, 256, 128>}]} {
    %c0 = arith.constant 0 : index
    %c0_0 = arith.constant 0 : index
    %c0_1 = arith.constant 0 : index
    %c0_2 = arith.constant 0 : index
    %0 = vector.load %arg4[%c0, %c0_0, %c0_1, %c0_2] : memref<1x4x256x128xf32, #tpu.memory_space<vmem>>, vector<1x1x256x128xf32>
    %1 = vector.shape_cast %0 : vector<1x1x256x128xf32> to vector<256x128xf32>
    %c0_3 = arith.constant 0 : index
    %2 = memref.load %arg2[%c0_3] : memref<4xf32, #tpu.memory_space<smem>>
    %3 = vector.broadcast %2 : f32 to vector<256x128xf32>
    %4 = arith.mulf %1, %3 : vector<256x128xf32>
    %c0_4 = arith.constant 0 : index
    %c1 = arith.constant 1 : index
    %c0_5 = arith.constant 0 : index
    %c0_6 = arith.constant 0 : index
    %5 = vector.load %arg4[%c0_4, %c1, %c0_5, %c0_6] : memref<1x4x256x128xf32, #tpu.memory_space<vmem>>, vector<1x1x256x128xf32>
    %6 = vector.shape_cast %5 : vector<1x1x256x128xf32> to vector<256x128xf32>
    %c1_7 = arith.constant 1 : index
    %7 = memref.load %arg2[%c1_7] : memref<4xf32, #tpu.memory_space<smem>>
    %8 = vector.broadcast %7 : f32 to vector<256x128xf32>
    %9 = arith.mulf %6, %8 : vector<256x128xf32>
    %10 = arith.addf %4, %9 : vector<256x128xf32>
    %c0_8 = arith.constant 0 : index
    %c2 = arith.constant 2 : index
    %c0_9 = arith.constant 0 : index
    %c0_10 = arith.constant 0 : index
    %11 = vector.load %arg4[%c0_8, %c2, %c0_9, %c0_10] : memref<1x4x256x128xf32, #tpu.memory_space<vmem>>, vector<1x1x256x128xf32>
    %12 = vector.shape_cast %11 : vector<1x1x256x128xf32> to vector<256x128xf32>
    %c2_11 = arith.constant 2 : index
    %13 = memref.load %arg2[%c2_11] : memref<4xf32, #tpu.memory_space<smem>>
    %14 = vector.broadcast %13 : f32 to vector<256x128xf32>
    %15 = arith.mulf %12, %14 : vector<256x128xf32>
    %16 = arith.addf %10, %15 : vector<256x128xf32>
    %c0_12 = arith.constant 0 : index
    %c3 = arith.constant 3 : index
    %c0_13 = arith.constant 0 : index
    %c0_14 = arith.constant 0 : index
    %17 = vector.load %arg4[%c0_12, %c3, %c0_13, %c0_14] : memref<1x4x256x128xf32, #tpu.memory_space<vmem>>, vector<1x1x256x128xf32>
    %18 = vector.shape_cast %17 : vector<1x1x256x128xf32> to vector<256x128xf32>
    %c3_15 = arith.constant 3 : index
    %19 = memref.load %arg2[%c3_15] : memref<4xf32, #tpu.memory_space<smem>>
    %20 = vector.broadcast %19 : f32 to vector<256x128xf32>
    %21 = arith.mulf %18, %20 : vector<256x128xf32>
    %22 = arith.addf %16, %21 : vector<256x128xf32>
    %c0_16 = arith.constant 0 : index
    %23 = memref.load %arg3[%c0_16] : memref<1xf32, #tpu.memory_space<smem>>
    %24 = vector.broadcast %23 : f32 to vector<256x128xf32>
    %25 = arith.addf %22, %24 : vector<256x128xf32>
    %c0_17 = arith.constant 0 : index
    %c0_18 = arith.constant 0 : index
    %c0_19 = arith.constant 0 : index
    %26 = vector.load %arg5[%c0_17, %c0_18, %c0_19] : memref<1x256x128xf32, #tpu.memory_space<vmem>>, vector<1x256x128xf32>
    %27 = vector.shape_cast %26 : vector<1x256x128xf32> to vector<256x128xf32>
    %28 = vector.shape_cast %25 : vector<256x128xf32> to vector<1x256x128xf32>
    tpu.vector_store %arg5[%c0_17, %c0_18, %c0_19], %28 {strides = array<i32>} : memref<1x256x128xf32, #tpu.memory_space<vmem>>, vector<1x256x128xf32>,
    return
  }
  func.func @transform_0(%arg0: i32, %arg1: i32) -> i32 {
    %c0_i32 = arith.constant 0 : i32
    %c0_i32_0 = arith.constant 0 : i32
    return %c0_i32 : i32
  }
  func.func @transform_1(%arg0: i32, %arg1: i32) -> i32 {
    %c0_i32 = arith.constant 0 : i32
    %c0_i32_0 = arith.constant 0 : i32
    return %c0_i32 : i32
  }
  func.func @transform_2(%arg0: i32, %arg1: i32) -> (i32, i32, i32, i32) {
    %c0_i32 = arith.constant 0 : i32
    %c0_i32_0 = arith.constant 0 : i32
    %c0_i32_1 = arith.constant 0 : i32
    return %arg0, %c0_i32, %arg1, %c0_i32_0 : i32, i32, i32, i32
  }
  func.func @transform_3(%arg0: i32, %arg1: i32) -> (i32, i32, i32) {
    %c0_i32 = arith.constant 0 : i32
    %c0_i32_0 = arith.constant 0 : i32
    return %arg0, %arg1, %c0_i32 : i32, i32, i32
  }
}

</mosaic_0001>

<bundles_post_ra>
// kernel: conv1x1x1_pallas.1
= control target key start
LH: loop header
LB: loop body
LE: loop exit
PB: predicated region body
PF: predicated region fallthrough
CT: control target
= control target key end

     0   :  { %s1366_s0 = inlined_call_operand.vmem [shape: f32[4], index: 0, kind: input, shape index: {}]   ;;  %s1367_s1 = inlined_call_operand.<no memory space> [shape: f32[1], index: 1, kind: input, shape index: {}]   ;;  %s1368_s2 = inlined_call_operand.vmem [shape: f32[2,4,256,128], index: 2, kind: input, shape index: {}]   ;;  %s1369_s3 = inlined_call_operand.vmem [shape: f32[2,256,128], index: 3, kind: output, shape index: {}]  }
   0x1   :  { %8 = sst [smem:[#allocation2]] %s1367_s1 }
   0x2   :  { %9 = vsyncpa [#allocation4], 0  ;;  %s969_s14 = smov 0   ;;  %s971_s15 = smov 0  }
   0x3   :  { %s973_s16 = smov 0  }
   0x4 LB: > { %s753_s1 = sadd.s32 4294967295, %s943_s16   ;;  %s27_s17 = sadd.s32 1, %s939_s15  ;;  %s943_s16 = sphi %s973_s16, %s15_s16   ;;  %s939_s15 = sphi %s971_s15, %s1373_s15   ;;  %s935_s14 = sphi %s969_s14, %s1372_s14  }
   0x5   : > { %p29_p0 = scmp.ge.s32.totalorder %s27_s17, 2  ;;  %p755_p1 = scmp.ge.s32.totalorder %s943_s16, 1 }
   0x6   : > { %p130_p2 = scmp.lt.s32.totalorder %s943_s16, 3  ;;  %p994_p4 = scmp.eq.s32.totalorder %s753_s1, 0 }
   0x7   : > { %s1375_s17 = smov (%p29_p0, %s27_s17), 0  ;;  %s143_s22 = sshll.u32 %s1366_s0, 4  ;;  %s144_s22 = int_to_ptr.vmem [resolvable:$true] %s143_s22 }
   0x8   : > { %p990_p3 = pnand %p755_p1, %p130_p2  ;;  %s902_s23 = scalar_lea.vmem %s144_s22, 16 }
   0x9   : > { %p903_p7 = scmp.ne.s32.totalorder %s144_s22, %s902_s23  ;;  %p910_p11 = scmp.lt.s32.totalorder %s144_s22, %s144_s22 }
   0xa   : > { %p871_p5 = pneg %p990_p3  ;;  %p911_p12 = scmp.lt.s32.totalorder %s902_s23, %s902_s23 }
   0xc   : > { %p872_p6 = pnand %p994_p4, %p871_p5  ;;  %p912_p13 = por %p911_p12, %p910_p11 }
   0xe   : > { %p904_p8 = pneg %p872_p6 }
  0x10   : > { %p905_p9 = pnand %p904_p8, %p903_p7 }
  0x12   : > { %p906_p10 = pneg %p905_p9 }
  0x14   : > { %p913_p0 = pnand %p912_p13, %p906_p10 }
  0x16   : > { %916 = shalt.err (!%p913_p0)
}
  0x17   : > { %s945_s24 = smov [#allocation3]   ;;  %172 = sbr.rel (%p990_p3) target bundleno = 113 (0x71), region = 32 }
  0x18   : > { %874 = dma.vmem_to_smem (!%p872_p6), %s144_s22, 16, %s945_s24, [#allocation4]  }
  0x1e   : > { %930 = dma.done.wait (%p994_p4), [#allocation4], 16  }
  0x1f   : > { %932 = vsyncadd (%p994_p4), [#allocation4], 4294967280 }
  0x20   : > { %178 = sfence }
  0x21   : > { %p206_p1 = scmp.lt.s32.totalorder %s935_s14, 1  ;;  %s257_s25 = sld [smem:[#allocation3]] }
  0x22   : > { %s796_s26 = sld [smem:[#allocation3 + $0x1]]  ;;  %s829_s27 = sld [smem:[#allocation3 + $0x2]] }
  0x23   : > { %s1377_s14 = smov (!%p206_p1, %s935_s14), 1  ;;  %s862_s28 = sld [smem:[#allocation3 + $0x3]] }
  0x24   : > { %s588_s29 = sld [smem:[#allocation2]]  ;;  %s865_s30 = sshll.u32 %s1377_s14, 10 }
  0x25   : > { %s1019_s6 = scalar_lea.vmem %s1368_s2, %s865_s30  ;;  %s866_s7 = sshll.u32 %s1377_s14, 8 }
  0x26   : > { %v225_v0 = vld [vmem:[%s1019_s6] sm:$0xff]  ;;  %v226_v8 = vld [vmem:[%s1019_s6 + $0x8] sm:$0xff]  ;;  %v227_v19 = vld [vmem:[%s1019_s6 + $0x10] sm:$0xff]  ;;  %s1078_s10 = scalar_lea.vmem %s1369_s3, %s866_s7 }
  0x27   : > { %v1022_v1 = vstv %s257_s25  ;;  %v764_v2 = vld [vmem:[%s1019_s6 + $0x100] sm:$0xff]  ;;  %v765_v12 = vld [vmem:[%s1019_s6 + $0x108] sm:$0xff]  ;;  %v766_v20 = vld [vmem:[%s1019_s6 + $0x110] sm:$0xff] }
  0x28   : > { %v797_v3 = vld [vmem:[%s1019_s6 + $0x200] sm:$0xff]  ;;  %v259_v4 = vmul.f32 %v1022_v1, %v225_v0  ;;  %v1027_v5 = vstv %s796_s26  ;;  %v1029_v6 = vstv %s829_s27  ;;  %v260_v11 = vmul.f32 %v1022_v1, %v226_v8  ;;  %v798_v13 = vld [vmem:[%s1019_s6 + $0x208] sm:$0xff] }
  0x29   : > { %v830_v7 = vld [vmem:[%s1019_s6 + $0x300] sm:$0xff]  ;;  %v326_v9 = vmul.f32 %v764_v2, %v1027_v5  ;;  %v425_v10 = vmul.f32 %v797_v3, %v1029_v6  ;;  %v831_v14 = vld [vmem:[%s1019_s6 + $0x308] sm:$0xff]  ;;  %v1039_v15 = vstv %s862_s28  ;;  %v327_v17 = vmul.f32 %v765_v12, %v1027_v5  ;;  %v799_v25 = vld [vmem:[%s1019_s6 + $0x210] sm:$0xff] }
  0x2a   : > { %v1041_v16 = vstv %s588_s29  ;;  %v426_v18 = vmul.f32 %v798_v13, %v1029_v6  ;;  %v524_v22 = vmul.f32 %v830_v7, %v1039_v15  ;;  %v525_v23 = vmul.f32 %v831_v14, %v1039_v15  ;;  %v832_v26 = vld [vmem:[%s1019_s6 + $0x310] sm:$0xff]  ;;  %v228_v27 = vld [vmem:[%s1019_s6 + $0x18] sm:$0xff]  ;;  %v229_v39 = vld [vmem:[%s1019_s6 + $0x20] sm:$0xff] }
  0x2b   : > { %v358_v21 = vadd.f32 %v326_v9, %v259_v4  ;;  %v261_v24 = vmul.f32 %v1022_v1, %v227_v19  ;;  %v359_v28 = vadd.f32 %v327_v17, %v260_v11  ;;  %v328_v29 = vmul.f32 %v766_v20, %v1027_v5  ;;  %v767_v32 = vld [vmem:[%s1019_s6 + $0x118] sm:$0xff]  ;;  %v768_v40 = vld [vmem:[%s1019_s6 + $0x120] sm:$0xff]  ;;  %v230_v47 = vld [vmem:[%s1019_s6 + $0x28] sm:$0xff] }
  0x2c   : > { %v427_v30 = vmul.f32 %v799_v25, %v1029_v6  ;;  %v526_v31 = vmul.f32 %v832_v26, %v1039_v15  ;;  %v800_v33 = vld [vmem:[%s1019_s6 + $0x218] sm:$0xff]  ;;  %v262_v36 = vmul.f32 %v1022_v1, %v228_v27  ;;  %v329_v37 = vmul.f32 %v767_v32, %v1027_v5  ;;  %v801_v41 = vld [vmem:[%s1019_s6 + $0x220] sm:$0xff]  ;;  %v769_v48 = vld [vmem:[%s1019_s6 + $0x128] sm:$0xff] }
  0x2d   : > { %v833_v34 = vld [vmem:[%s1019_s6 + $0x318] sm:$0xff]  ;;  %v457_v35 = vadd.f32 %v425_v10, %v358_v21  ;;  %v428_v38 = vmul.f32 %v800_v33, %v1029_v6  ;;  %v458_v42 = vadd.f32 %v426_v18, %v359_v28  ;;  %v360_v43 = vadd.f32 %v328_v29, %v261_v24  ;;  %v834_v46 = vld [vmem:[%s1019_s6 + $0x320] sm:$0xff]  ;;  %v802_v53 = vld [vmem:[%s1019_s6 + $0x228] sm:$0xff] }
  0x2e   : > { %v527_v44 = vmul.f32 %v833_v34, %v1039_v15  ;;  %v263_v45 = vmul.f32 %v1022_v1, %v229_v39  ;;  %v361_v50 = vadd.f32 %v329_v37, %v262_v36  ;;  %v330_v51 = vmul.f32 %v768_v40, %v1027_v5  ;;  %v835_v54 = vld [vmem:[%s1019_s6 + $0x328] sm:$0xff]  ;;  %v231_v59 = vld [vmem:[%s1019_s6 + $0x30] sm:$0xff]  ;;  %v232_v10 = vld [vmem:[%s1019_s6 + $0x38] sm:$0xff] }
  0x2f   : > { %v556_v49 = vadd.f32 %v524_v22, %v457_v35  ;;  %v429_v52 = vmul.f32 %v801_v41, %v1029_v6  ;;  %v557_v55 = vadd.f32 %v525_v23, %v458_v42  ;;  %v459_v56 = vadd.f32 %v427_v30, %v360_v43  ;;  %v770_v0 = vld [vmem:[%s1019_s6 + $0x130] sm:$0xff]  ;;  %v771_v17 = vld [vmem:[%s1019_s6 + $0x138] sm:$0xff]  ;;  %v233_v24 = vld [vmem:[%s1019_s6 + $0x40] sm:$0xff] }
  0x30   : > { %v528_v57 = vmul.f32 %v834_v46, %v1039_v15  ;;  %v264_v58 = vmul.f32 %v1022_v1, %v230_v47  ;;  %v460_v61 = vadd.f32 %v428_v38, %v361_v50  ;;  %v362_v62 = vadd.f32 %v330_v51, %v263_v45  ;;  %v803_v2 = vld [vmem:[%s1019_s6 + $0x230] sm:$0xff]  ;;  %v804_v18 = vld [vmem:[%s1019_s6 + $0x238] sm:$0xff]  ;;  %v772_v25 = vld [vmem:[%s1019_s6 + $0x140] sm:$0xff] }
  0x31   : > { %v590_v60 = vadd.f32 %v1041_v16, %v556_v49  ;;  %v331_v63 = vmul.f32 %v769_v48, %v1027_v5  ;;  %v836_v3 = vld [vmem:[%s1019_s6 + $0x330] sm:$0xff]  ;;  %v591_v4 = vadd.f32 %v1041_v16, %v557_v55  ;;  %v558_v7 = vadd.f32 %v526_v31, %v459_v56  ;;  %v837_v19 = vld [vmem:[%s1019_s6 + $0x338] sm:$0xff]  ;;  %v805_v30 = vld [vmem:[%s1019_s6 + $0x240] sm:$0xff] }
  0x32   : > { %v430_v8 = vmul.f32 %v802_v53, %v1029_v6  ;;  %v529_v9 = vmul.f32 %v835_v54, %v1039_v15  ;;  %v559_v11 = vadd.f32 %v527_v44, %v460_v61  ;;  %v461_v12 = vadd.f32 %v429_v52, %v362_v62  ;;  %v838_v31 = vld [vmem:[%s1019_s6 + $0x340] sm:$0xff]  ;;  %v234_v36 = vld [vmem:[%s1019_s6 + $0x48] sm:$0xff]  ;;  %v235_v48 = vld [vmem:[%s1019_s6 + $0x50] sm:$0xff] }
  0x33   : > { %622 = vst [vmem:[%s1078_s10] sm:$0xff] %v590_v60  ;;  %v363_v13 = vadd.f32 %v331_v63, %v264_v58  ;;  %v265_v14 = vmul.f32 %v1022_v1, %v231_v59  ;;  %623 = vst [vmem:[%s1078_s10 + $0x8] sm:$0xff] %v591_v4  ;;  %v592_v20 = vadd.f32 %v1041_v16, %v558_v7  ;;  %v773_v37 = vld [vmem:[%s1019_s6 + $0x148] sm:$0xff]  ;;  %v774_v49 = vld [vmem:[%s1019_s6 + $0x150] sm:$0xff] }
  0x34   : > { %v332_v21 = vmul.f32 %v770_v0, %v1027_v5  ;;  %v431_v22 = vmul.f32 %v803_v2, %v1029_v6  ;;  %v530_v23 = vmul.f32 %v836_v3, %v1039_v15  ;;  %v593_v26 = vadd.f32 %v1041_v16, %v559_v11  ;;  %v806_v42 = vld [vmem:[%s1019_s6 + $0x248] sm:$0xff]  ;;  %v807_v54 = vld [vmem:[%s1019_s6 + $0x250] sm:$0xff]  ;;  %v236_v60 = vld [vmem:[%s1019_s6 + $0x58] sm:$0xff] }
  0x35   : > { %v560_v27 = vadd.f32 %v528_v57, %v461_v12  ;;  %v462_v28 = vadd.f32 %v430_v8, %v363_v13  ;;  %v266_v29 = vmul.f32 %v1022_v1, %v232_v10  ;;  %624 = vst [vmem:[%s1078_s10 + $0x10] sm:$0xff] %v592_v20  ;;  %v333_v33 = vmul.f32 %v771_v17, %v1027_v5  ;;  %v839_v43 = vld [vmem:[%s1019_s6 + $0x348] sm:$0xff]  ;;  %v840_v55 = vld [vmem:[%s1019_s6 + $0x350] sm:$0xff]  ;;  %v775_v2 = vld [vmem:[%s1019_s6 + $0x158] sm:$0xff] }
  0x36   : > { %v364_v32 = vadd.f32 %v332_v21, %v265_v14  ;;  %v432_v34 = vmul.f32 %v804_v18, %v1029_v6  ;;  %v531_v35 = vmul.f32 %v837_v19, %v1039_v15  ;;  %625 = vst [vmem:[%s1078_s10 + $0x18] sm:$0xff] %v593_v26  ;;  %v267_v40 = vmul.f32 %v1022_v1, %v233_v24  ;;  %v808_v3 = vld [vmem:[%s1019_s6 + $0x258] sm:$0xff]  ;;  %v237_v11 = vld [vmem:[%s1019_s6 + $0x60] sm:$0xff]  ;;  %v777_v26 = vld [vmem:[%s1019_s6 + $0x168] sm:$0xff] }
  0x37   : > { %v594_v38 = vadd.f32 %v1041_v16, %v560_v27  ;;  %v561_v39 = vadd.f32 %v529_v9, %v462_v28  ;;  %v334_v41 = vmul.f32 %v772_v25, %v1027_v5  ;;  %v365_v45 = vadd.f32 %v333_v33, %v266_v29  ;;  %v841_v4 = vld [vmem:[%s1019_s6 + $0x358] sm:$0xff]  ;;  %v776_v18 = vld [vmem:[%s1019_s6 + $0x160] sm:$0xff]  ;;  %v238_v25 = vld [vmem:[%s1019_s6 + $0x68] sm:$0xff] }
  0x38   : > { %v463_v44 = vadd.f32 %v431_v22, %v364_v32  ;;  %v433_v46 = vmul.f32 %v805_v30, %v1029_v6  ;;  %v532_v47 = vmul.f32 %v838_v31, %v1039_v15  ;;  %v268_v52 = vmul.f32 %v1022_v1, %v234_v36  ;;  %v809_v19 = vld [vmem:[%s1019_s6 + $0x260] sm:$0xff]  ;;  %v810_v31 = vld [vmem:[%s1019_s6 + $0x268] sm:$0xff] }
  0x39   : > { %626 = vst [vmem:[%s1078_s10 + $0x20] sm:$0xff] %v594_v38  ;;  %v595_v50 = vadd.f32 %v1041_v16, %v561_v39  ;;  %v366_v51 = vadd.f32 %v334_v41, %v267_v40  ;;  %v335_v53 = vmul.f32 %v773_v37, %v1027_v5  ;;  %v464_v57 = vadd.f32 %v432_v34, %v365_v45  ;;  %v842_v20 = vld [vmem:[%s1019_s6 + $0x360] sm:$0xff]  ;;  %v843_v32 = vld [vmem:[%s1019_s6 + $0x368] sm:$0xff]  ;;  %v239_v37 = vld [vmem:[%s1019_s6 + $0x70] sm:$0xff] }
  0x3a   : > { %v562_v56 = vadd.f32 %v530_v23, %v463_v44  ;;  %v434_v58 = vmul.f32 %v806_v42, %v1029_v6  ;;  %v533_v59 = vmul.f32 %v839_v43, %v1039_v15  ;;  %v269_v63 = vmul.f32 %v1022_v1, %v235_v48  ;;  %v778_v38 = vld [vmem:[%s1019_s6 + $0x170] sm:$0xff] }
  0x3b   : > { %627 = vst [vmem:[%s1078_s10 + $0x28] sm:$0xff] %v595_v50  ;;  %v465_v61 = vadd.f32 %v433_v46, %v366_v51  ;;  %v367_v62 = vadd.f32 %v335_v53, %v268_v52  ;;  %v336_v0 = vmul.f32 %v774_v49, %v1027_v5  ;;  %v563_v8 = vadd.f32 %v531_v35, %v464_v57  ;;  %v811_v43 = vld [vmem:[%s1019_s6 + $0x270] sm:$0xff]  ;;  %v240_v49 = vld [vmem:[%s1019_s6 + $0x78] sm:$0xff] }
  0x3c   : > { %v596_v7 = vadd.f32 %v1041_v16, %v562_v56  ;;  %v435_v9 = vmul.f32 %v807_v54, %v1029_v6  ;;  %v534_v10 = vmul.f32 %v840_v55, %v1039_v15  ;;  %v270_v17 = vmul.f32 %v1022_v1, %v236_v60  ;;  %v844_v44 = vld [vmem:[%s1019_s6 + $0x370] sm:$0xff]  ;;  %v779_v50 = vld [vmem:[%s1019_s6 + $0x178] sm:$0xff] }
  0x3d   : > { %v564_v12 = vadd.f32 %v532_v47, %v465_v61  ;;  %v466_v13 = vadd.f32 %v434_v58, %v367_v62  ;;  %v368_v14 = vadd.f32 %v336_v0, %v269_v63  ;;  %v597_v21 = vadd.f32 %v1041_v16, %v563_v8  ;;  %v812_v55 = vld [vmem:[%s1019_s6 + $0x278] sm:$0xff]  ;;  %v241_v61 = vld [vmem:[%s1019_s6 + $0x80] sm:$0xff] }
  0x3e   : > { %628 = vst [vmem:[%s1078_s10 + $0x30] sm:$0xff] %v596_v7  ;;  %v337_v22 = vmul.f32 %v775_v2, %v1027_v5  ;;  %v436_v23 = vmul.f32 %v808_v3, %v1029_v6  ;;  %v535_v24 = vmul.f32 %v841_v4, %v1039_v15  ;;  %v271_v30 = vmul.f32 %v1022_v1, %v237_v11  ;;  %v845_v56 = vld [vmem:[%s1019_s6 + $0x378] sm:$0xff]  ;;  %v780_v3 = vld [vmem:[%s1019_s6 + $0x180] sm:$0xff] }
  0x3f   : > { %v598_v27 = vadd.f32 %v1041_v16, %v564_v12  ;;  %v565_v28 = vadd.f32 %v533_v59, %v466_v13  ;;  %v467_v29 = vadd.f32 %v435_v9, %v368_v14  ;;  %629 = vst [vmem:[%s1078_s10 + $0x38] sm:$0xff] %v597_v21  ;;  %v338_v34 = vmul.f32 %v776_v18, %v1027_v5  ;;  %v813_v4 = vld [vmem:[%s1019_s6 + $0x280] sm:$0xff]  ;;  %v242_v12 = vld [vmem:[%s1019_s6 + $0x88] sm:$0xff] }
  0x40   : > { %v369_v33 = vadd.f32 %v337_v22, %v270_v17  ;;  %v437_v35 = vmul.f32 %v809_v19, %v1029_v6  ;;  %v536_v36 = vmul.f32 %v842_v20, %v1039_v15  ;;  %v272_v41 = vmul.f32 %v1022_v1, %v238_v25  ;;  %v846_v7 = vld [vmem:[%s1019_s6 + $0x380] sm:$0xff]  ;;  %v781_v19 = vld [vmem:[%s1019_s6 + $0x188] sm:$0xff] }
  0x41   : > { %630 = vst [vmem:[%s1078_s10 + $0x40] sm:$0xff] %v598_v27  ;;  %v599_v39 = vadd.f32 %v1041_v16, %v565_v28  ;;  %v566_v40 = vadd.f32 %v534_v10, %v467_v29  ;;  %v339_v42 = vmul.f32 %v777_v26, %v1027_v5  ;;  %v370_v46 = vadd.f32 %v338_v34, %v271_v30  ;;  %v814_v20 = vld [vmem:[%s1019_s6 + $0x288] sm:$0xff]  ;;  %v243_v26 = vld [vmem:[%s1019_s6 + $0x90] sm:$0xff] }
  0x42   : > { %v468_v45 = vadd.f32 %v436_v23, %v369_v33  ;;  %v438_v47 = vmul.f32 %v810_v31, %v1029_v6  ;;  %v537_v48 = vmul.f32 %v843_v32, %v1039_v15  ;;  %v273_v53 = vmul.f32 %v1022_v1, %v239_v37  ;;  %v847_v21 = vld [vmem:[%s1019_s6 + $0x388] sm:$0xff]  ;;  %v782_v27 = vld [vmem:[%s1019_s6 + $0x190] sm:$0xff] }
  0x43   : > { %631 = vst [vmem:[%s1078_s10 + $0x48] sm:$0xff] %v599_v39  ;;  %v600_v51 = vadd.f32 %v1041_v16, %v566_v40  ;;  %v371_v52 = vadd.f32 %v339_v42, %v272_v41  ;;  %v340_v54 = vmul.f32 %v778_v38, %v1027_v5  ;;  %v469_v58 = vadd.f32 %v437_v35, %v370_v46  ;;  %v815_v32 = vld [vmem:[%s1019_s6 + $0x290] sm:$0xff]  ;;  %v244_v38 = vld [vmem:[%s1019_s6 + $0x98] sm:$0xff] }
  0x44   : > { %v567_v57 = vadd.f32 %v535_v24, %v468_v45  ;;  %v439_v59 = vmul.f32 %v811_v43, %v1029_v6  ;;  %v538_v60 = vmul.f32 %v844_v44, %v1039_v15  ;;  %v274_v0 = vmul.f32 %v1022_v1, %v240_v49  ;;  %v848_v33 = vld [vmem:[%s1019_s6 + $0x390] sm:$0xff]  ;;  %v783_v39 = vld [vmem:[%s1019_s6 + $0x198] sm:$0xff] }
  0x45   : > { %632 = vst [vmem:[%s1078_s10 + $0x50] sm:$0xff] %v600_v51  ;;  %v470_v62 = vadd.f32 %v438_v47, %v371_v52  ;;  %v372_v63 = vadd.f32 %v340_v54, %v273_v53  ;;  %v341_v2 = vmul.f32 %v779_v50, %v1027_v5  ;;  %v568_v9 = vadd.f32 %v536_v36, %v469_v58  ;;  %v816_v44 = vld [vmem:[%s1019_s6 + $0x298] sm:$0xff]  ;;  %v245_v50 = vld [vmem:[%s1019_s6 + $0xa0] sm:$0xff] }
  0x46   : > { %v601_v8 = vadd.f32 %v1041_v16, %v567_v57  ;;  %v440_v10 = vmul.f32 %v812_v55, %v1029_v6  ;;  %v539_v11 = vmul.f32 %v845_v56, %v1039_v15  ;;  %v275_v18 = vmul.f32 %v1022_v1, %v241_v61  ;;  %v849_v45 = vld [vmem:[%s1019_s6 + $0x398] sm:$0xff]  ;;  %v784_v51 = vld [vmem:[%s1019_s6 + $0x1a0] sm:$0xff] }
  0x47   : > { %v569_v13 = vadd.f32 %v537_v48, %v470_v62  ;;  %v471_v14 = vadd.f32 %v439_v59, %v372_v63  ;;  %v373_v17 = vadd.f32 %v341_v2, %v274_v0  ;;  %v602_v22 = vadd.f32 %v1041_v16, %v568_v9  ;;  %v817_v56 = vld [vmem:[%s1019_s6 + $0x2a0] sm:$0xff]  ;;  %v246_v62 = vld [vmem:[%s1019_s6 + $0xa8] sm:$0xff] }
  0x48   : > { %633 = vst [vmem:[%s1078_s10 + $0x58] sm:$0xff] %v601_v8  ;;  %v342_v23 = vmul.f32 %v780_v3, %v1027_v5  ;;  %v441_v24 = vmul.f32 %v813_v4, %v1029_v6  ;;  %v540_v25 = vmul.f32 %v846_v7, %v1039_v15  ;;  %v276_v31 = vmul.f32 %v1022_v1, %v242_v12  ;;  %v850_v57 = vld [vmem:[%s1019_s6 + $0x3a0] sm:$0xff]  ;;  %v785_v4 = vld [vmem:[%s1019_s6 + $0x1a8] sm:$0xff] }
  0x49   : > { %v603_v28 = vadd.f32 %v1041_v16, %v569_v13  ;;  %v570_v29 = vadd.f32 %v538_v60, %v471_v14  ;;  %v472_v30 = vadd.f32 %v440_v10, %v373_v17  ;;  %634 = vst [vmem:[%s1078_s10 + $0x60] sm:$0xff] %v602_v22  ;;  %v343_v35 = vmul.f32 %v781_v19, %v1027_v5  ;;  %v818_v7 = vld [vmem:[%s1019_s6 + $0x2a8] sm:$0xff]  ;;  %v247_v13 = vld [vmem:[%s1019_s6 + $0xb0] sm:$0xff] }
  0x4a   : > { %v374_v34 = vadd.f32 %v342_v23, %v275_v18  ;;  %v442_v36 = vmul.f32 %v814_v20, %v1029_v6  ;;  %v541_v37 = vmul.f32 %v847_v21, %v1039_v15  ;;  %v277_v42 = vmul.f32 %v1022_v1, %v243_v26  ;;  %v851_v8 = vld [vmem:[%s1019_s6 + $0x3a8] sm:$0xff]  ;;  %v786_v20 = vld [vmem:[%s1019_s6 + $0x1b0] sm:$0xff] }
  0x4b   : > { %635 = vst [vmem:[%s1078_s10 + $0x68] sm:$0xff] %v603_v28  ;;  %v604_v40 = vadd.f32 %v1041_v16, %v570_v29  ;;  %v571_v41 = vadd.f32 %v539_v11, %v472_v30  ;;  %v344_v43 = vmul.f32 %v782_v27, %v1027_v5  ;;  %v375_v47 = vadd.f32 %v343_v35, %v276_v31  ;;  %v819_v21 = vld [vmem:[%s1019_s6 + $0x2b0] sm:$0xff]  ;;  %v248_v27 = vld [vmem:[%s1019_s6 + $0xb8] sm:$0xff] }
  0x4c   : > { %v473_v46 = vadd.f32 %v441_v24, %v374_v34  ;;  %v443_v48 = vmul.f32 %v815_v32, %v1029_v6  ;;  %v542_v49 = vmul.f32 %v848_v33, %v1039_v15  ;;  %v278_v54 = vmul.f32 %v1022_v1, %v244_v38  ;;  %v852_v22 = vld [vmem:[%s1019_s6 + $0x3b0] sm:$0xff]  ;;  %v787_v28 = vld [vmem:[%s1019_s6 + $0x1b8] sm:$0xff] }
  0x4d   : > { %636 = vst [vmem:[%s1078_s10 + $0x70] sm:$0xff] %v604_v40  ;;  %v605_v52 = vadd.f32 %v1041_v16, %v571_v41  ;;  %v376_v53 = vadd.f32 %v344_v43, %v277_v42  ;;  %v345_v55 = vmul.f32 %v783_v39, %v1027_v5  ;;  %v474_v59 = vadd.f32 %v442_v36, %v375_v47  ;;  %v820_v33 = vld [vmem:[%s1019_s6 + $0x2b8] sm:$0xff]  ;;  %v249_v39 = vld [vmem:[%s1019_s6 + $0xc0] sm:$0xff] }
  0x4e   : > { %v572_v58 = vadd.f32 %v540_v25, %v473_v46  ;;  %v444_v60 = vmul.f32 %v816_v44, %v1029_v6  ;;  %v543_v61 = vmul.f32 %v849_v45, %v1039_v15  ;;  %v279_v2 = vmul.f32 %v1022_v1, %v245_v50  ;;  %v853_v34 = vld [vmem:[%s1019_s6 + $0x3b8] sm:$0xff]  ;;  %v788_v40 = vld [vmem:[%s1019_s6 + $0x1c0] sm:$0xff] }
  0x4f   : > { %637 = vst [vmem:[%s1078_s10 + $0x78] sm:$0xff] %v605_v52  ;;  %v475_v63 = vadd.f32 %v443_v48, %v376_v53  ;;  %v377_v0 = vadd.f32 %v345_v55, %v278_v54  ;;  %v346_v3 = vmul.f32 %v784_v51, %v1027_v5  ;;  %v573_v10 = vadd.f32 %v541_v37, %v474_v59  ;;  %v821_v45 = vld [vmem:[%s1019_s6 + $0x2c0] sm:$0xff]  ;;  %v250_v51 = vld [vmem:[%s1019_s6 + $0xc8] sm:$0xff] }
  0x50   : > { %v606_v9 = vadd.f32 %v1041_v16, %v572_v58  ;;  %v445_v11 = vmul.f32 %v817_v56, %v1029_v6  ;;  %v544_v12 = vmul.f32 %v850_v57, %v1039_v15  ;;  %v280_v19 = vmul.f32 %v1022_v1, %v246_v62  ;;  %v854_v46 = vld [vmem:[%s1019_s6 + $0x3c0] sm:$0xff]  ;;  %v789_v52 = vld [vmem:[%s1019_s6 + $0x1c8] sm:$0xff] }
  0x51   : > { %v574_v14 = vadd.f32 %v542_v49, %v475_v63  ;;  %v476_v17 = vadd.f32 %v444_v60, %v377_v0  ;;  %v378_v18 = vadd.f32 %v346_v3, %v279_v2  ;;  %v607_v23 = vadd.f32 %v1041_v16, %v573_v10  ;;  %v822_v57 = vld [vmem:[%s1019_s6 + $0x2c8] sm:$0xff]  ;;  %v251_v63 = vld [vmem:[%s1019_s6 + $0xd0] sm:$0xff] }
  0x52   : > { %638 = vst [vmem:[%s1078_s10 + $0x80] sm:$0xff] %v606_v9  ;;  %v347_v24 = vmul.f32 %v785_v4, %v1027_v5  ;;  %v446_v25 = vmul.f32 %v818_v7, %v1029_v6  ;;  %v545_v26 = vmul.f32 %v851_v8, %v1039_v15  ;;  %v281_v32 = vmul.f32 %v1022_v1, %v247_v13  ;;  %v855_v58 = vld [vmem:[%s1019_s6 + $0x3c8] sm:$0xff]  ;;  %v790_v7 = vld [vmem:[%s1019_s6 + $0x1d0] sm:$0xff] }
  0x53   : > { %v608_v29 = vadd.f32 %v1041_v16, %v574_v14  ;;  %v575_v30 = vadd.f32 %v543_v61, %v476_v17  ;;  %v477_v31 = vadd.f32 %v445_v11, %v378_v18  ;;  %639 = vst [vmem:[%s1078_s10 + $0x88] sm:$0xff] %v607_v23  ;;  %v348_v36 = vmul.f32 %v786_v20, %v1027_v5  ;;  %v823_v8 = vld [vmem:[%s1019_s6 + $0x2d0] sm:$0xff]  ;;  %v252_v14 = vld [vmem:[%s1019_s6 + $0xd8] sm:$0xff] }
  0x54   : > { %v379_v35 = vadd.f32 %v347_v24, %v280_v19  ;;  %v447_v37 = vmul.f32 %v819_v21, %v1029_v6  ;;  %v546_v38 = vmul.f32 %v852_v22, %v1039_v15  ;;  %v282_v43 = vmul.f32 %v1022_v1, %v248_v27  ;;  %v856_v9 = vld [vmem:[%s1019_s6 + $0x3d0] sm:$0xff]  ;;  %v791_v21 = vld [vmem:[%s1019_s6 + $0x1d8] sm:$0xff] }
  0x55   : > { %640 = vst [vmem:[%s1078_s10 + $0x90] sm:$0xff] %v608_v29  ;;  %v609_v41 = vadd.f32 %v1041_v16, %v575_v30  ;;  %v576_v42 = vadd.f32 %v544_v12, %v477_v31  ;;  %v349_v44 = vmul.f32 %v787_v28, %v1027_v5  ;;  %v380_v48 = vadd.f32 %v348_v36, %v281_v32  ;;  %v824_v22 = vld [vmem:[%s1019_s6 + $0x2d8] sm:$0xff]  ;;  %v253_v28 = vld [vmem:[%s1019_s6 + $0xe0] sm:$0xff] }
  0x56   : > { %v478_v47 = vadd.f32 %v446_v25, %v379_v35  ;;  %v448_v49 = vmul.f32 %v820_v33, %v1029_v6  ;;  %v547_v50 = vmul.f32 %v853_v34, %v1039_v15  ;;  %v283_v55 = vmul.f32 %v1022_v1, %v249_v39  ;;  %v857_v23 = vld [vmem:[%s1019_s6 + $0x3d8] sm:$0xff]  ;;  %v792_v29 = vld [vmem:[%s1019_s6 + $0x1e0] sm:$0xff] }
  0x57   : > { %641 = vst [vmem:[%s1078_s10 + $0x98] sm:$0xff] %v609_v41  ;;  %v610_v53 = vadd.f32 %v1041_v16, %v576_v42  ;;  %v381_v54 = vadd.f32 %v349_v44, %v282_v43  ;;  %v350_v56 = vmul.f32 %v788_v40, %v1027_v5  ;;  %v479_v60 = vadd.f32 %v447_v37, %v380_v48  ;;  %v825_v34 = vld [vmem:[%s1019_s6 + $0x2e0] sm:$0xff]  ;;  %v254_v40 = vld [vmem:[%s1019_s6 + $0xe8] sm:$0xff] }
  0x58   : > { %v577_v59 = vadd.f32 %v545_v26, %v478_v47  ;;  %v449_v61 = vmul.f32 %v821_v45, %v1029_v6  ;;  %v548_v62 = vmul.f32 %v854_v46, %v1039_v15  ;;  %v284_v3 = vmul.f32 %v1022_v1, %v250_v51  ;;  %v858_v35 = vld [vmem:[%s1019_s6 + $0x3e0] sm:$0xff]  ;;  %v793_v41 = vld [vmem:[%s1019_s6 + $0x1e8] sm:$0xff] }
  0x59   : > { %642 = vst [vmem:[%s1078_s10 + $0xa0] sm:$0xff] %v610_v53  ;;  %v480_v0 = vadd.f32 %v448_v49, %v381_v54  ;;  %v382_v2 = vadd.f32 %v350_v56, %v283_v55  ;;  %v351_v4 = vmul.f32 %v789_v52, %v1027_v5  ;;  %v578_v11 = vadd.f32 %v546_v38, %v479_v60  ;;  %v826_v46 = vld [vmem:[%s1019_s6 + $0x2e8] sm:$0xff]  ;;  %v255_v52 = vld [vmem:[%s1019_s6 + $0xf0] sm:$0xff] }
  0x5a   : > { %v611_v10 = vadd.f32 %v1041_v16, %v577_v59  ;;  %v450_v12 = vmul.f32 %v822_v57, %v1029_v6  ;;  %v549_v13 = vmul.f32 %v855_v58, %v1039_v15  ;;  %v285_v20 = vmul.f32 %v1022_v1, %v251_v63  ;;  %v859_v47 = vld [vmem:[%s1019_s6 + $0x3e8] sm:$0xff]  ;;  %v794_v53 = vld [vmem:[%s1019_s6 + $0x1f0] sm:$0xff] }
  0x5b   : > { %v579_v17 = vadd.f32 %v547_v50, %v480_v0  ;;  %v481_v18 = vadd.f32 %v449_v61, %v382_v2  ;;  %v383_v19 = vadd.f32 %v351_v4, %v284_v3  ;;  %v612_v24 = vadd.f32 %v1041_v16, %v578_v11  ;;  %v827_v58 = vld [vmem:[%s1019_s6 + $0x2f0] sm:$0xff]  ;;  %v256_v0 = vld [vmem:[%s1019_s6 + $0xf8] sm:$0xff] }
  0x5c   : > { %643 = vst [vmem:[%s1078_s10 + $0xa8] sm:$0xff] %v611_v10  ;;  %v352_v25 = vmul.f32 %v790_v7, %v1027_v5  ;;  %v451_v26 = vmul.f32 %v823_v8, %v1029_v6  ;;  %v550_v27 = vmul.f32 %v856_v9, %v1039_v15  ;;  %v286_v33 = vmul.f32 %v1022_v1, %v252_v14  ;;  %v860_v59 = vld [vmem:[%s1019_s6 + $0x3f0] sm:$0xff]  ;;  %v795_v8 = vld [vmem:[%s1019_s6 + $0x1f8] sm:$0xff] }
  0x5d   : > { %v613_v30 = vadd.f32 %v1041_v16, %v579_v17  ;;  %v580_v31 = vadd.f32 %v548_v62, %v481_v18  ;;  %v482_v32 = vadd.f32 %v450_v12, %v383_v19  ;;  %644 = vst [vmem:[%s1078_s10 + $0xb0] sm:$0xff] %v612_v24  ;;  %v353_v37 = vmul.f32 %v791_v21, %v1027_v5  ;;  %v828_v9 = vld [vmem:[%s1019_s6 + $0x2f8] sm:$0xff] }
  0x5e   : > { %v384_v36 = vadd.f32 %v352_v25, %v285_v20  ;;  %v452_v38 = vmul.f32 %v824_v22, %v1029_v6  ;;  %v551_v39 = vmul.f32 %v857_v23, %v1039_v15  ;;  %v287_v44 = vmul.f32 %v1022_v1, %v253_v28  ;;  %v861_v20 = vld [vmem:[%s1019_s6 + $0x3f8] sm:$0xff] }
  0x5f   : > { %645 = vst [vmem:[%s1078_s10 + $0xb8] sm:$0xff] %v613_v30  ;;  %v614_v42 = vadd.f32 %v1041_v16, %v580_v31  ;;  %v581_v43 = vadd.f32 %v549_v13, %v482_v32  ;;  %v354_v45 = vmul.f32 %v792_v29, %v1027_v5  ;;  %v385_v49 = vadd.f32 %v353_v37, %v286_v33 }
  0x60   : > { %v483_v48 = vadd.f32 %v451_v26, %v384_v36  ;;  %v453_v50 = vmul.f32 %v825_v34, %v1029_v6  ;;  %v552_v51 = vmul.f32 %v858_v35, %v1039_v15  ;;  %v288_v56 = vmul.f32 %v1022_v1, %v254_v40 }
  0x61   : > { %646 = vst [vmem:[%s1078_s10 + $0xc0] sm:$0xff] %v614_v42  ;;  %v615_v54 = vadd.f32 %v1041_v16, %v581_v43  ;;  %v386_v55 = vadd.f32 %v354_v45, %v287_v44  ;;  %v355_v57 = vmul.f32 %v793_v41, %v1027_v5  ;;  %v484_v61 = vadd.f32 %v452_v38, %v385_v49 }
  0x62   : > { %v582_v60 = vadd.f32 %v550_v27, %v483_v48  ;;  %v454_v62 = vmul.f32 %v826_v46, %v1029_v6  ;;  %v553_v63 = vmul.f32 %v859_v47, %v1039_v15  ;;  %v289_v4 = vmul.f32 %v1022_v1, %v255_v52 }
  0x63   : > { %647 = vst [vmem:[%s1078_s10 + $0xc8] sm:$0xff] %v615_v54  ;;  %v485_v2 = vadd.f32 %v453_v50, %v386_v55  ;;  %v387_v3 = vadd.f32 %v355_v57, %v288_v56  ;;  %v356_v7 = vmul.f32 %v794_v53, %v1027_v5  ;;  %v583_v11 = vadd.f32 %v551_v39, %v484_v61 }
  0x64   : > { %v616_v10 = vadd.f32 %v1041_v16, %v582_v60  ;;  %v455_v12 = vmul.f32 %v827_v58, %v1029_v6  ;;  %v554_v13 = vmul.f32 %v860_v59, %v1039_v15  ;;  %v290_v19 = vmul.f32 %v1022_v1, %v256_v0 }
  0x65   : > { %v584_v14 = vadd.f32 %v552_v51, %v485_v2  ;;  %v486_v17 = vadd.f32 %v454_v62, %v387_v3  ;;  %v388_v18 = vadd.f32 %v356_v7, %v289_v4  ;;  %v617_v21 = vadd.f32 %v1041_v16, %v583_v11 }
  0x66   : > { %648 = vst [vmem:[%s1078_s10 + $0xd0] sm:$0xff] %v616_v10  ;;  %v357_v22 = vmul.f32 %v795_v8, %v1027_v5  ;;  %v456_v23 = vmul.f32 %v828_v9, %v1029_v6  ;;  %v555_v28 = vmul.f32 %v861_v20, %v1039_v15 }
  0x67   : > { %v618_v24 = vadd.f32 %v1041_v16, %v584_v14  ;;  %v585_v25 = vadd.f32 %v553_v63, %v486_v17  ;;  %v487_v26 = vadd.f32 %v455_v12, %v388_v18  ;;  %649 = vst [vmem:[%s1078_s10 + $0xd8] sm:$0xff] %v617_v21 }
  0x68   : > { %v389_v27 = vadd.f32 %v357_v22, %v290_v19 }
  0x69   : > { %650 = vst [vmem:[%s1078_s10 + $0xe0] sm:$0xff] %v618_v24  ;;  %v619_v1 = vadd.f32 %v1041_v16, %v585_v25  ;;  %v586_v29 = vadd.f32 %v554_v13, %v487_v26 }
  0x6a   : > { %v488_v30 = vadd.f32 %v456_v23, %v389_v27 }
  0x6b   : > { %651 = vst [vmem:[%s1078_s10 + $0xe8] sm:$0xff] %v619_v1  ;;  %v620_v31 = vadd.f32 %v1041_v16, %v586_v29 }
  0x6c   : > { %v587_v5 = vadd.f32 %v555_v28, %v488_v30 }
  0x6d   : > { %652 = vst [vmem:[%s1078_s10 + $0xf0] sm:$0xff] %v620_v31 }
  0x6e   : > { %v621_v6 = vadd.f32 %v1041_v16, %v587_v5 }
  0x70   : > { %653 = vst [vmem:[%s1078_s10 + $0xf8] sm:$0xff] %v621_v6 }
  0x71 PF: > { %s15_s16 = sadd.s32 1, %s943_s16   ;;  %s1372_s14 = smov %s939_s15 }
  0x72   : > { %p12_p2 = scmp.ge.s32.totalorder %s15_s16, 4   ;;  %s1373_s15 = smov %s1375_s17 }
  0x74   :  { %14 = sbr.rel (!%p12_p2) target bundleno = 4 (0x4), region = 70 }
  0x7b   :  { %684 = vsyncpa [#allocation4], 1 }
  0x7c   :  { %686 = vsyncpa [#allocation4 + $0x1], 1 }

</bundles_post_ra>
